<compile_context>
chip_gen: v7x
topology: tpu7x:2x2x1
jax: 0.10.0
libtpu: 0.0.40
codegen_flags: <defaults>
</compile_context>

<pallas_src>
import functools

import numpy as np

import jax
import jax.numpy as jnp
from jax.experimental import pallas as pl
from jax.experimental.pallas import tpu as pltpu


def _round_up(x, m):
    return (x + m - 1) // m * m


def _textcnn_fused_kernel(x_ref, w_ref, mb_ref, o_ref, *, max_fs, out_pad, l_pad):
    # x_ref:  (Bt, S_ext, E_pad)            activations, time zero-padded so that
    #                                       S_ext >= l_pad + max_fs - 1
    # w_ref:  (E_pad, max_fs * out_pad)     all taps of all filter sizes, packed
    # mb_ref: (l_pad, out_pad)              bias on valid (t, c), -1e30 elsewhere
    # o_ref:  (Bt, out_pad)                 pooled + ReLU'd features (lane-dense)
    bt, s_ext, e_pad = x_ref.shape
    width = max_fs * out_pad

    # One big MXU matmul over all taps / filter sizes at once (f32 accumulation).
    x2 = x_ref[...].reshape(bt * s_ext, e_pad)
    z = jnp.dot(x2, w_ref[...], preferred_element_type=jnp.float32)
    z3 = z.reshape(bt, s_ext, width)

    # Shift-add the per-tap 128-aligned column blocks of the small result.  Rows
    # past the real sequence are zero (zero-padded x), so the shifted windows are
    # always safe; the accumulator starts from the broadcast mask(+bias).
    acc = mb_ref[...][None, :, :] + z3[:, 0:l_pad, 0:out_pad]
    for i in range(1, max_fs):
        acc = acc + z3[:, i:i + l_pad, i * out_pad:(i + 1) * out_pad]

    pooled = jnp.max(acc, axis=1)                 # global max-pool over time
    # ReLU after pooling (monotone; bias already folded into the mask).
    o_ref[...] = jnp.maximum(pooled, 0.0).astype(o_ref.dtype)


def textcnn_forward(x_p, w_cat, mask_bias, *, block_b, max_fs, out_pad, l_pad):
    """x_p: (B_pad, S_ext, E_pad) padded activations; returns (B_pad, out_pad) f32."""
    b_pad, s_ext, e_pad = x_p.shape
    width = max_fs * out_pad
    kernel = functools.partial(_textcnn_fused_kernel, max_fs=max_fs,
                               out_pad=out_pad, l_pad=l_pad)
    return pl.pallas_call(
        kernel,
        out_shape=jax.ShapeDtypeStruct((b_pad, out_pad), jnp.float32),
        grid=(b_pad // block_b,),
        in_specs=[
            pl.BlockSpec((block_b, s_ext, e_pad), lambda b: (b, 0, 0)),
            pl.BlockSpec((e_pad, width), lambda b: (0, 0)),
            pl.BlockSpec((l_pad, out_pad), lambda b: (0, 0)),
        ],
        out_specs=pl.BlockSpec((block_b, out_pad), lambda b: (b, 0)),
        compiler_params=pltpu.CompilerParams(
            dimension_semantics=("parallel",),    # batch tiles shardable across TCs
            vmem_limit_bytes=32 * 1024 * 1024,
        ),
    )(x_p, w_cat, mask_bias)


@functools.partial(jax.jit, static_argnames=(
    "block_b", "b_pad", "s_ext", "e_pad", "max_fs", "out_pad", "l_pad",
    "batch", "out_dim", "compute_dtype"))
def _encoder_cnn_forward(x_sbe, w_cat, mask_bias, *, block_b, b_pad, s_ext,
                         e_pad, max_fs, out_pad, l_pad, batch, out_dim,
                         compute_dtype):
    S, B, E = x_sbe.shape
    x_bse = jnp.transpose(x_sbe, (1, 0, 2))        # == input.permute(1, 0, 2)
    x_p = jnp.pad(x_bse, ((0, b_pad - B), (0, s_ext - S), (0, e_pad - E)))
    out = textcnn_forward(
        x_p.astype(compute_dtype), w_cat.astype(compute_dtype), mask_bias,
        block_b=block_b, max_fs=max_fs, out_pad=out_pad, l_pad=l_pad)
    # Drop batch / lane padding; dropout == identity in eval mode.
    return out[:batch, :out_dim]


class EncoderCNNPallas:
    """JAX/Pallas port of EncoderCNN.forward (eval mode)."""

    def __init__(self, embedding_dim, n_filters, filter_sizes, output_dim,
                 dropout=0.3, *, key):
        del output_dim                        # self.fc is never applied in forward()
        self.E = int(embedding_dim)
        self.F = int(n_filters)
        self.filter_sizes = tuple(int(fs) for fs in filter_sizes)
        self.max_fs = max(self.filter_sizes)
        self.out_dim = len(self.filter_sizes) * self.F
        self.dropout = dropout                # identity at inference
        self.E_pad = _round_up(self.E, 128)
        self.out_pad = _round_up(self.out_dim, 128)

        keys = jax.random.split(key, 2 * len(self.filter_sizes))
        self.raw_weights, self.raw_biases = [], []
        for idx, fs in enumerate(self.filter_sizes):
            # PyTorch Conv2d weight layout: (n_filters, 1, fs, embedding_dim)
            w = 0.1 * jax.random.normal(
                keys[2 * idx], (self.F, 1, fs, self.E), jnp.float32)
            b = 0.1 * jax.random.normal(keys[2 * idx + 1], (self.F,), jnp.float32)
            self.raw_weights.append(w)
            self.raw_biases.append(b)

        # Pack every tap of every filter size into one matrix so the kernel does a
        # single (B*S_ext, E_pad) x (E_pad, max_fs*out_pad) matmul.  Tap i of
        # filter j lands in columns [i*out_pad + j*F, i*out_pad + (j+1)*F); unused
        # taps and all padding columns/rows are zero.
        w_cat = np.zeros((self.E_pad, self.max_fs * self.out_pad), np.float32)
        for j, fs in enumerate(self.filter_sizes):
            wj = np.asarray(self.raw_weights[j])          # (F, 1, fs, E)
            col = j * self.F
            for i in range(fs):
                base = i * self.out_pad + col
                w_cat[:self.E, base:base + self.F] = wj[:, 0, i, :].T
        self.w_cat = jnp.asarray(w_cat)
        self._mask_cache = {}

    def _mask_bias(self, S):
        """(l_pad, out_pad) tensor: bias on valid (time, col), -1e30 elsewhere."""
        if S not in self._mask_cache:
            l_pad = _round_up(S, 8)
            mb = np.full((l_pad, self.out_pad), -1e30, np.float32)
            for j, fs in enumerate(self.filter_sizes):
                L = S - fs + 1                              # valid conv positions
                mb[:L, j * self.F:(j + 1) * self.F] = (
                    np.asarray(self.raw_biases[j])[None, :])
            self._mask_cache[S] = jnp.asarray(mb)
        return self._mask_cache[S]

    def __call__(self, x_sbe, *, compute_dtype=jnp.float32, block_b=None):
        # x_sbe: (seq, batch, emb) -- same layout as the PyTorch forward input.
        S, B, E = x_sbe.shape
        if E != self.E:
            raise ValueError(f"embedding dim mismatch: {E} != {self.E}")
        if S < self.max_fs:
            raise ValueError("seq_len must be >= max(filter_sizes)")

        l_pad = _round_up(S, 8)
        s_ext = _round_up(l_pad + self.max_fs - 1, 8)     # room for shifted taps

        if block_b is None:
            # Keep (double-buffered x tile + matmul intermediate + accumulator)
            # comfortably under the VMEM budget.
            itemsize = jnp.dtype(compute_dtype).itemsize
            per_row = (s_ext * (2 * self.E_pad * itemsize
                                + self.max_fs * self.out_pad * 4)
                       + l_pad * self.out_pad * 4)
            block_b = max(8, min(512, (16 * 1024 * 1024 // per_row) // 8 * 8))
        blk = min(_round_up(block_b, 8), _round_up(B, 8))
        b_pad = _round_up(B, blk)

        return _encoder_cnn_forward(
            x_sbe, self.w_cat, self._mask_bias(S),
            block_b=blk, b_pad=b_pad, s_ext=s_ext, e_pad=self.E_pad,
            max_fs=self.max_fs, out_pad=self.out_pad, l_pad=l_pad,
            batch=B, out_dim=self.out_dim, compute_dtype=compute_dtype)


def _reference_forward(model, x_sbe):
    """Pure-JAX (XLA) reference with the original per-filter structure."""
    xb = jnp.transpose(x_sbe, (1, 0, 2))
    B, S, _ = xb.shape
    outs = []
    for fs, w, b in zip(model.filter_sizes, model.raw_weights, model.raw_biases):
        L = S - fs + 1
        acc = jnp.zeros((B, L, model.F), jnp.float32)
        for i in range(fs):
            acc = acc + jnp.einsum("ble,fe->blf", xb[:, i:i + L, :], w[:, 0, i, :])
        acc = jax.nn.relu(acc + b[None, None, :])
        outs.append(jnp.max(acc, axis=1))
    return jnp.concatenate(outs, axis=1)


if __name__ == "__main__":
    seq_len = 8
    batch = 2
    embedding_dim = 32
    n_filters = 8
    filter_sizes = (2, 3, 4)
    output_dim = 16          # unused by forward (fc is never applied)

    key = jax.random.PRNGKey(0)
    k_param, k_input = jax.random.split(key)

    model = EncoderCNNPallas(embedding_dim, n_filters, filter_sizes,
                             output_dim, dropout=0.3, key=k_param)

    # forward() input layout: (seq, batch, embedding_dim)
    x = jax.random.normal(k_input, (seq_len, batch, embedding_dim), jnp.float32)

    out = jax.block_until_ready(model(x))                       # f32 compute path
    ref = jax.block_until_ready(_reference_forward(model, x))

    assert out.shape == (batch, len(filter_sizes) * n_filters), out.shape
    assert jnp.allclose(out, ref, atol=1e-4, rtol=1e-4), (
        f"Pallas/XLA mismatch: max|diff|={float(jnp.max(jnp.abs(out - ref)))}")

    # bf16 compute path (MXU-native on v6e/v7x; accumulation stays f32).
    out_bf16 = jax.block_until_ready(model(x, compute_dtype=jnp.bfloat16))
    assert float(jnp.max(jnp.abs(out_bf16 - ref))) < 0.1, "bf16 path diverged"

    print("KERNEL_OK")
</pallas_src>

<mosaic_0001>
module attributes {stable_mosaic.version = 11 : i64} {
  func.func @_textcnn_fused_kernel(%arg0: i32, %arg1: memref<8x16x128xf32, #tpu.memory_space<vmem>>, %arg2: memref<128x512xf32, #tpu.memory_space<vmem>>, %arg3: memref<8x128xf32, #tpu.memory_space<vmem>>, %arg4: memref<8x128xf32, #tpu.memory_space<vmem>>) attributes {dimension_semantics = [#tpu.dimension_semantics<parallel>], iteration_bounds = array<i64: 1>, scalar_prefetch = 0 : i64, scratch_operands = 0 : i64, tpu.core_type = #tpu.core_type<tc>, window_params = [{transform_indices = @transform_0, window_bounds = array<i64: 8, 16, 128>}, {pipeline_mode = #tpu.pipeline_mode<synchronous>, transform_indices = @transform_1, window_bounds = array<i64: 128, 512>}, {pipeline_mode = #tpu.pipeline_mode<synchronous>, transform_indices = @transform_2, window_bounds = array<i64: 8, 128>}, {transform_indices = @transform_3, window_bounds = array<i64: 8, 128>}]} {
    %c0 = arith.constant 0 : index
    %c0_0 = arith.constant 0 : index
    %c0_1 = arith.constant 0 : index
    %0 = vector.load %arg1[%c0, %c0_0, %c0_1] : memref<8x16x128xf32, #tpu.memory_space<vmem>>, vector<8x16x128xf32>
    %1 = vector.shape_cast %0 : vector<8x16x128xf32> to vector<128x128xf32>
    %c0_2 = arith.constant 0 : index
    %c0_3 = arith.constant 0 : index
    %2 = vector.load %arg2[%c0_2, %c0_3] : memref<128x512xf32, #tpu.memory_space<vmem>>, vector<128x512xf32>
    %cst = arith.constant dense<0.000000e+00> : vector<128x512xf32>
    %3 = tpu.matmul %1, %2, %cst {dimension_numbers = #tpu.dot_dimension_numbers<[1], [0], [0], [1], [0, 0, 1, 1], [], []>} : vector<128x128xf32>, vector<128x512xf32>, vector<128x512xf32> -> vector<128x512xf32>
    %4 = vector.shape_cast %3 : vector<128x512xf32> to vector<8x16x512xf32>
    %c0_4 = arith.constant 0 : index
    %c0_5 = arith.constant 0 : index
    %5 = vector.load %arg3[%c0_4, %c0_5] : memref<8x128xf32, #tpu.memory_space<vmem>>, vector<8x128xf32>
    %6 = vector.shape_cast %5 : vector<8x128xf32> to vector<1x8x128xf32>
    %7 = vector.extract_strided_slice %4 {offsets = [0, 0, 0], sizes = [8, 8, 128], strides = [1, 1, 1]} : vector<8x16x512xf32> to vector<8x8x128xf32>
    %8 = vector.broadcast %6 : vector<1x8x128xf32> to vector<8x8x128xf32>
    %9 = arith.addf %8, %7 : vector<8x8x128xf32>
    %10 = vector.extract_strided_slice %4 {offsets = [0, 1, 128], sizes = [8, 8, 128], strides = [1, 1, 1]} : vector<8x16x512xf32> to vector<8x8x128xf32>
    %11 = arith.addf %9, %10 : vector<8x8x128xf32>
    %12 = vector.extract_strided_slice %4 {offsets = [0, 2, 256], sizes = [8, 8, 128], strides = [1, 1, 1]} : vector<8x16x512xf32> to vector<8x8x128xf32>
    %13 = arith.addf %11, %12 : vector<8x8x128xf32>
    %14 = vector.extract_strided_slice %4 {offsets = [0, 3, 384], sizes = [8, 8, 128], strides = [1, 1, 1]} : vector<8x16x512xf32> to vector<8x8x128xf32>
    %15 = arith.addf %13, %14 : vector<8x8x128xf32>
    %cst_6 = arith.constant dense<0xFF800000> : vector<8x128xf32>
    %16 = vector.multi_reduction <maximumf>, %15, %cst_6 [1] : vector<8x8x128xf32> to vector<8x128xf32>
    %cst_7 = arith.constant 0.000000e+00 : f32
    %17 = vector.broadcast %cst_7 : f32 to vector<8x128xf32>
    %18 = arith.maximumf %16, %17 : vector<8x128xf32>
    %c0_8 = arith.constant 0 : index
    %c0_9 = arith.constant 0 : index
    %19 = vector.load %arg4[%c0_8, %c0_9] : memref<8x128xf32, #tpu.memory_space<vmem>>, vector<8x128xf32>
    tpu.vector_store %arg4[%c0_8, %c0_9], %18 {strides = array<i32>} : memref<8x128xf32, #tpu.memory_space<vmem>>, vector<8x128xf32>,
    return
  }
  func.func @transform_0(%arg0: i32) -> (i32, i32, i32) {
    %c0_i32 = arith.constant 0 : i32
    %c0_i32_0 = arith.constant 0 : i32
    %c0_i32_1 = arith.constant 0 : i32
    return %arg0, %c0_i32, %c0_i32_0 : i32, i32, i32
  }
  func.func @transform_1(%arg0: i32) -> (i32, i32) {
    %c0_i32 = arith.constant 0 : i32
    %c0_i32_0 = arith.constant 0 : i32
    %c0_i32_1 = arith.constant 0 : i32
    return %c0_i32, %c0_i32_0 : i32, i32
  }
  func.func @transform_2(%arg0: i32) -> (i32, i32) {
    %c0_i32 = arith.constant 0 : i32
    %c0_i32_0 = arith.constant 0 : i32
    %c0_i32_1 = arith.constant 0 : i32
    return %c0_i32, %c0_i32_0 : i32, i32
  }
  func.func @transform_3(%arg0: i32) -> (i32, i32) {
    %c0_i32 = arith.constant 0 : i32
    %c0_i32_0 = arith.constant 0 : i32
    return %arg0, %c0_i32 : i32, i32
  }
}

</mosaic_0001>

<bundles_post_ra>
// kernel: _encoder_cnn_forward.1
= control target key start
LH: loop header
LB: loop body
LE: loop exit
PB: predicated region body
PF: predicated region fallthrough
CT: control target
= control target key end

     0   :  { %8 = vsyncpa [#allocation3], 0  ;;  %s779_s12 = smov [#allocation2]   ;;  %s935_s0 = inlined_call_operand.vmem [shape: f32[8,16,128], index: 0, kind: input, shape index: {}]   ;;  %s936_s1 = inlined_call_operand.hbm [shape: f32[128,512], index: 1, kind: input, shape index: {}]   ;;  %s937_s2 = inlined_call_operand.vmem [shape: f32[8,128], index: 2, kind: input, shape index: {}]   ;;  %s938_s3 = inlined_call_operand.vmem [shape: f32[8,128], index: 3, kind: output, shape index: {}]  }
   0x1   :  { %s16_s13 = sshll.u32 %s779_s12, 4  ;;  %s755_s16 = scalar_lea.hbm %s936_s1, 8192  ;;  %s17_s13 = int_to_ptr.vmem [resolvable:$true] %s16_s13 }
   0x2   :  { %p756_p0 = scmp.ne.s32.totalorder %s936_s1, %s755_s16  ;;  %p759_p1 = scmp.lt.u32.totalorder %s755_s16, %s936_s1 }
   0x4   :  { %p761_p2 = pnand %p759_p1, %p756_p0 }
   0x6   :  { %764 = shalt.err (!%p761_p2)
}
   0x7   :  { %s765_s21 = scalar_lea.vmem %s17_s13, 8192  ;;  %p770_p4 = scmp.lt.s32.totalorder %s17_s13, %s17_s13 }
   0x8   :  { %p766_p3 = scmp.ne.s32.totalorder %s17_s13, %s765_s21  ;;  %p771_p5 = scmp.lt.s32.totalorder %s765_s21, %s765_s21 }
   0xa   :  { %p772_p6 = por %p771_p5, %p770_p4 }
   0xc   :  { %p773_p7 = pnand %p772_p6, %p766_p3 }
   0xe   :  { %776 = shalt.err (!%p773_p7)
}
   0xf   :  { %s780_s22 = smov 512   ;;  %s781_s23 = smov 32  }
  0x10   :  { %22 = dma.hbm_to_vmem [thread:$0]  %s936_s1, 8192, %s17_s13, [#allocation3], %s780_s22, %s780_s22, %s781_s23  }
  0x11   :  { %777 = dma.done.wait [#allocation3], 8192  }
  0x12   :  { %778 = vsyncadd [#allocation3], 4294959104  ;;  %v782_v0 = vmov 0.0   ;;  %v45_v1 = vld [vmem:[#allocation2 + $0x8] sm:$0xff]  ;;  %v47_v3 = vld [vmem:[#allocation2 + $0x18] sm:$0xff]  ;;  %vm504_vm0 = vcmask 1045504  }
  0x13   :  { %172 = vmatprep.mubr.f32.mxu0 %v782_v0  ;;  %325 = vmatprep.mubr.f32.mxu1 %v782_v0  ;;  %v49_v2 = vld [vmem:[#allocation2 + $0x28] sm:$0xff]  ;;  %v51_v5 = vld [vmem:[#allocation2 + $0x38] sm:$0xff]  ;;  %v44_v6 = vld [vmem:[#allocation2] sm:$0xff]  ;;  %vm447_vm1 = vcmask 1046528   ;;  %vm561_vm2 = vcmask 1044480   ;;  %vm666_vm3 = vcmask 1041409  }
  0x14   :  { %v687_v4 = vpack.c.bf16 %v49_v2, %v45_v1  ;;  %v48_v7 = vld [vmem:[#allocation2 + $0x20] sm:$0xff]  ;;  %v719_v8 = vpack.c.bf16 %v51_v5, %v47_v3  ;;  %v46_v10 = vld [vmem:[#allocation2 + $0x10] sm:$0xff]  ;;  %v53_v12 = vld [vmem:[#allocation2 + $0x48] sm:$0xff]  ;;  %vm668_vm4 = vcmask 1042434   ;;  %vm670_vm5 = vcmask 1043459  }
  0x15   :  { %v689_v9 = vpack.c.bf16 %v48_v7, %v44_v6  ;;  %v50_v11 = vld [vmem:[#allocation2 + $0x30] sm:$0xff]  ;;  %v57_v14 = vld [vmem:[#allocation2 + $0x68] sm:$0xff]  ;;  %v55_v15 = vld [vmem:[#allocation2 + $0x58] sm:$0xff]  ;;  %vm672_vm6 = vcmask 1044484   ;;  %vm674_vm7 = vcmask 1045509   ;;  %vm676_vm8 = vcmask 1046534  }
  0x16   :  { %688 = vmatprep.subr.bf16.mxu0 %v687_v4  ;;  %v721_v13 = vpack.c.bf16 %v50_v11, %v46_v10  ;;  %v59_v16 = vld [vmem:[#allocation2 + $0x78] sm:$0xff]  ;;  %720 = vmatprep.subr.bf16.mxu1 %v719_v8  ;;  %v691_v17 = vpack.c.bf16 %v57_v14, %v53_v12  ;;  %v52_v19 = vld [vmem:[#allocation2 + $0x40] sm:$0xff]  ;;  %v54_v21 = vld [vmem:[#allocation2 + $0x50] sm:$0xff]  ;;  %vm678_vm9 = vcmask 1047559  }
  0x17   :  { %690 = vmatpush1.bf16.msra.mxu0 %v689_v9  ;;  %v723_v18 = vpack.c.bf16 %v59_v16, %v55_v15  ;;  %v56_v20 = vld [vmem:[#allocation2 + $0x60] sm:$0xff]  ;;  %v58_v23 = vld [vmem:[#allocation2 + $0x70] sm:$0xff]  ;;  %v61_v24 = vld [vmem:[#allocation2 + $0x88] sm:$0xff] }
  0x18   :  { %722 = vmatpush1.bf16.msra.mxu1 %v721_v13  ;;  %v693_v22 = vpack.c.bf16 %v56_v20, %v52_v19  ;;  %v65_v25 = vld [vmem:[#allocation2 + $0xa8] sm:$0xff]  ;;  %692 = vmatprep.subr.bf16.mxu0 %v691_v17  ;;  %v725_v26 = vpack.c.bf16 %v58_v23, %v54_v21  ;;  %v63_v28 = vld [vmem:[#allocation2 + $0x98] sm:$0xff]  ;;  %v60_v30 = vld [vmem:[#allocation2 + $0x80] sm:$0xff] }
  0x19   :  { %724 = vmatprep.subr.bf16.mxu1 %v723_v18  ;;  %v695_v27 = vpack.c.bf16 %v65_v25, %v61_v24  ;;  %v67_v29 = vld [vmem:[#allocation2 + $0xb8] sm:$0xff]  ;;  %v64_v32 = vld [vmem:[#allocation2 + $0xa0] sm:$0xff]  ;;  %v62_v33 = vld [vmem:[#allocation2 + $0x90] sm:$0xff] }
  0x1a   :  { %v727_v31 = vpack.c.bf16 %v67_v29, %v63_v28  ;;  %v66_v34 = vld [vmem:[#allocation2 + $0xb0] sm:$0xff]  ;;  %v697_v35 = vpack.c.bf16 %v64_v32, %v60_v30  ;;  %v69_v36 = vld [vmem:[#allocation2 + $0xc8] sm:$0xff]  ;;  %v71_v38 = vld [vmem:[#allocation2 + $0xd8] sm:$0xff] }
  0x1b   :  { %694 = vmatpush1.bf16.msra.mxu0 %v693_v22  ;;  %v73_v37 = vld [vmem:[#allocation2 + $0xe8] sm:$0xff]  ;;  %v729_v39 = vpack.c.bf16 %v66_v34, %v62_v33  ;;  %v75_v41 = vld [vmem:[#allocation2 + $0xf8] sm:$0xff]  ;;  %v68_v42 = vld [vmem:[#allocation2 + $0xc0] sm:$0xff] }
  0x1c   :  { %726 = vmatpush1.bf16.msra.mxu1 %v725_v26  ;;  %696 = vmatprep.subr.bf16.mxu0 %v695_v27  ;;  %v699_v40 = vpack.c.bf16 %v73_v37, %v69_v36  ;;  %v72_v43 = vld [vmem:[#allocation2 + $0xe0] sm:$0xff]  ;;  %v731_v44 = vpack.c.bf16 %v75_v41, %v71_v38  ;;  %v70_v45 = vld [vmem:[#allocation2 + $0xd0] sm:$0xff]  ;;  %v77_v47 = vld [vmem:[#allocation2 + $0x108] sm:$0xff] }
  0x1d   :  { %728 = vmatprep.subr.bf16.mxu1 %v727_v31  ;;  %v74_v46 = vld [vmem:[#allocation2 + $0xf0] sm:$0xff]  ;;  %v81_v48 = vld [vmem:[#allocation2 + $0x128] sm:$0xff]  ;;  %v79_v49 = vld [vmem:[#allocation2 + $0x118] sm:$0xff]  ;;  %v701_v51 = vpack.c.bf16 %v72_v43, %v68_v42 }
  0x1e   :  { %v83_v50 = vld [vmem:[#allocation2 + $0x138] sm:$0xff]  ;;  %v733_v52 = vpack.c.bf16 %v74_v46, %v70_v45  ;;  %v703_v53 = vpack.c.bf16 %v81_v48, %v77_v47  ;;  %v76_v54 = vld [vmem:[#allocation2 + $0x100] sm:$0xff]  ;;  %v78_v56 = vld [vmem:[#allocation2 + $0x110] sm:$0xff] }
  0x1f   :  { %698 = vmatpush1.bf16.msra.mxu0 %v697_v35  ;;  %v80_v55 = vld [vmem:[#allocation2 + $0x120] sm:$0xff]  ;;  %v735_v57 = vpack.c.bf16 %v83_v50, %v79_v49  ;;  %v82_v58 = vld [vmem:[#allocation2 + $0x130] sm:$0xff]  ;;  %v85_v59 = vld [vmem:[#allocation2 + $0x148] sm:$0xff] }
  0x20   :  { %730 = vmatpush1.bf16.msra.mxu1 %v729_v39  ;;  %700 = vmatprep.subr.bf16.mxu0 %v699_v40  ;;  %v89_v60 = vld [vmem:[#allocation2 + $0x168] sm:$0xff]  ;;  %v87_v61 = vld [vmem:[#allocation2 + $0x158] sm:$0xff]  ;;  %v705_v63 = vpack.c.bf16 %v80_v55, %v76_v54  ;;  %v737_v1 = vpack.c.bf16 %v82_v58, %v78_v56  ;;  %v84_v3 = vld [vmem:[#allocation2 + $0x140] sm:$0xff] }
  0x21   :  { %732 = vmatprep.subr.bf16.mxu1 %v731_v44  ;;  %v91_v62 = vld [vmem:[#allocation2 + $0x178] sm:$0xff]  ;;  %v707_v2 = vpack.c.bf16 %v89_v60, %v85_v59  ;;  %v88_v4 = vld [vmem:[#allocation2 + $0x160] sm:$0xff]  ;;  %v86_v5 = vld [vmem:[#allocation2 + $0x150] sm:$0xff] }
  0x22   :  { %v739_v6 = vpack.c.bf16 %v91_v62, %v87_v61  ;;  %v90_v7 = vld [vmem:[#allocation2 + $0x170] sm:$0xff]  ;;  %v93_v8 = vld [vmem:[#allocation2 + $0x188] sm:$0xff]  ;;  %v95_v10 = vld [vmem:[#allocation2 + $0x198] sm:$0xff]  ;;  %v709_v12 = vpack.c.bf16 %v88_v4, %v84_v3 }
  0x23   :  { %702 = vmatpush1.bf16.msra.mxu0 %v701_v51  ;;  %v97_v9 = vld [vmem:[#allocation2 + $0x1a8] sm:$0xff]  ;;  %v99_v11 = vld [vmem:[#allocation2 + $0x1b8] sm:$0xff]  ;;  %v741_v13 = vpack.c.bf16 %v90_v7, %v86_v5  ;;  %v92_v15 = vld [vmem:[#allocation2 + $0x180] sm:$0xff] }
  0x24   :  { %734 = vmatpush1.bf16.msra.mxu1 %v733_v52  ;;  %704 = vmatprep.subr.bf16.mxu0 %v703_v53  ;;  %v711_v14 = vpack.c.bf16 %v97_v9, %v93_v8  ;;  %v96_v16 = vld [vmem:[#allocation2 + $0x1a0] sm:$0xff]  ;;  %v94_v17 = vld [vmem:[#allocation2 + $0x190] sm:$0xff]  ;;  %v743_v18 = vpack.c.bf16 %v99_v11, %v95_v10  ;;  %v101_v20 = vld [vmem:[#allocation2 + $0x1c8] sm:$0xff] }
  0x25   :  { %736 = vmatprep.subr.bf16.mxu1 %v735_v57  ;;  %v98_v19 = vld [vmem:[#allocation2 + $0x1b0] sm:$0xff]  ;;  %v105_v21 = vld [vmem:[#allocation2 + $0x1e8] sm:$0xff]  ;;  %v103_v22 = vld [vmem:[#allocation2 + $0x1d8] sm:$0xff]  ;;  %v713_v24 = vpack.c.bf16 %v96_v16, %v92_v15 }
  0x26   :  { %v107_v23 = vld [vmem:[#allocation2 + $0x1f8] sm:$0xff]  ;;  %v745_v25 = vpack.c.bf16 %v98_v19, %v94_v17  ;;  %v715_v26 = vpack.c.bf16 %v105_v21, %v101_v20  ;;  %v100_v27 = vld [vmem:[#allocation2 + $0x1c0] sm:$0xff]  ;;  %v102_v30 = vld [vmem:[#allocation2 + $0x1d0] sm:$0xff] }
  0x27   :  { %706 = vmatpush1.bf16.msra.mxu0 %v705_v63  ;;  %v104_v28 = vld [vmem:[#allocation2 + $0x1e0] sm:$0xff]  ;;  %v747_v29 = vpack.c.bf16 %v107_v23, %v103_v22  ;;  %v106_v31 = vld [vmem:[#allocation2 + $0x1f0] sm:$0xff]  ;;  %v29_v35 = vld [vmem:[%s935_s0 + $0x8] sm:$0xff] }
  0x28   :  { %738 = vmatpush1.bf16.msra.mxu1 %v737_v1  ;;  %708 = vmatprep.subr.bf16.mxu0 %v707_v2  ;;  %v717_v32 = vpack.c.bf16 %v104_v28, %v100_v27  ;;  %v749_v33 = vpack.c.bf16 %v106_v31, %v102_v30  ;;  %v28_v34 = vld [vmem:[%s935_s0] sm:$0xff]  ;;  %v30_v36 = vld [vmem:[%s935_s0 + $0x10] sm:$0xff]  ;;  %v31_v37 = vld [vmem:[%s935_s0 + $0x18] sm:$0xff] }
  0x29   :  { %740 = vmatprep.subr.bf16.mxu1 %v739_v6  ;;  %v32_v38 = vld [vmem:[%s935_s0 + $0x20] sm:$0xff]  ;;  %v33_v39 = vld [vmem:[%s935_s0 + $0x28] sm:$0xff]  ;;  %v34_v40 = vld [vmem:[%s935_s0 + $0x30] sm:$0xff] }
  0x2a   :  { %v35_v41 = vld [vmem:[%s935_s0 + $0x38] sm:$0xff]  ;;  %v36_v42 = vld [vmem:[%s935_s0 + $0x40] sm:$0xff]  ;;  %v37_v43 = vld [vmem:[%s935_s0 + $0x48] sm:$0xff] }
  0x2b   :  { %710 = vmatpush1.bf16.msra.mxu0 %v709_v12  ;;  %v38_v44 = vld [vmem:[%s935_s0 + $0x50] sm:$0xff]  ;;  %v39_v45 = vld [vmem:[%s935_s0 + $0x58] sm:$0xff]  ;;  %v40_v46 = vld [vmem:[%s935_s0 + $0x60] sm:$0xff] }
  0x2c   :  { %742 = vmatpush1.bf16.msra.mxu1 %v741_v13  ;;  %712 = vmatprep.subr.bf16.mxu0 %v711_v14  ;;  %v41_v47 = vld [vmem:[%s935_s0 + $0x68] sm:$0xff]  ;;  %v42_v48 = vld [vmem:[%s935_s0 + $0x70] sm:$0xff]  ;;  %v43_v49 = vld [vmem:[%s935_s0 + $0x78] sm:$0xff] }
  0x2d   :  { %744 = vmatprep.subr.bf16.mxu1 %v743_v18  ;;  %v898_v54 = vld [vmem:[%s937_s2] sm:$0xff] }
  0x2f   :  { %714 = vmatpush1.bf16.msra.mxu0 %v713_v24 }
  0x30   :  { %746 = vmatpush1.bf16.msra.mxu1 %v745_v25  ;;  %716 = vmatprep.subr.bf16.mxu0 %v715_v26 }
  0x31   :  { %748 = vmatprep.subr.bf16.mxu1 %v747_v29 }
  0x33   :  { %718 = vmatpush1.bf16.msra.mxu0 %v717_v32 }
  0x34   :  { %750 = vmatpush1.bf16.msra.mxu1 %v749_v33 }
  0x36   :  { %173 = vmatmul.mubr.f32.vlgmr.msra.gmra.mrb[0].mxu0 %v28_v34 }
  0x37   :  { %326 = vmatmul.mubr.f32.vlgmr.msra.gmra.mrb[0].mxu1 %v28_v34  ;;  %178 = vmatprep.mubr.f32.mxu0 %v782_v0 }
  0x38   :  { %331 = vmatprep.mubr.f32.mxu1 %v782_v0 }
  0x3a   :  { %179 = vmatmul.mubr.f32.gmra.mrb[2].mxu0 %v29_v35 }
  0x3b   :  { %332 = vmatmul.mubr.f32.gmra.mrb[2].mxu1 %v29_v35  ;;  %183 = vmatprep.mubr.f32.mxu0 %v782_v0 }
  0x3c   :  { %337 = vmatprep.mubr.f32.mxu1 %v782_v0 }
  0x3e   :  { %184 = vmatmul.mubr.f32.gmra.mrb[4].mxu0 %v30_v36 }
  0x3f   :  { %338 = vmatmul.mubr.f32.gmra.mrb[4].mxu1 %v30_v36  ;;  %189 = vmatprep.mubr.f32.mxu0 %v782_v0 }
  0x40   :  { %343 = vmatprep.mubr.f32.mxu1 %v782_v0 }
  0x42   :  { %190 = vmatmul.mubr.f32.gmra.mrb[6].mxu0 %v31_v37 }
  0x43   :  { %344 = vmatmul.mubr.f32.gmra.mrb[6].mxu1 %v31_v37  ;;  %194 = vmatprep.mubr.f32.mxu0 %v782_v0 }
  0x44   :  { %349 = vmatprep.mubr.f32.mxu1 %v782_v0 }
  0x46   :  { %195 = vmatmul.mubr.f32.gmra.mrb[8].mxu0 %v32_v38 }
  0x47   :  { %350 = vmatmul.mubr.f32.gmra.mrb[8].mxu1 %v32_v38  ;;  %200 = vmatprep.mubr.f32.mxu0 %v782_v0 }
  0x48   :  { %355 = vmatprep.mubr.f32.mxu1 %v782_v0 }
  0x4a   :  { %201 = vmatmul.mubr.f32.gmra.mrb[10].mxu0 %v33_v39 }
  0x4b   :  { %356 = vmatmul.mubr.f32.gmra.mrb[10].mxu1 %v33_v39  ;;  %205 = vmatprep.mubr.f32.mxu0 %v782_v0 }
  0x4c   :  { %361 = vmatprep.mubr.f32.mxu1 %v782_v0 }
  0x4e   :  { %206 = vmatmul.mubr.f32.gmra.mrb[12].mxu0 %v34_v40 }
  0x4f   :  { %362 = vmatmul.mubr.f32.gmra.mrb[12].mxu1 %v34_v40  ;;  %211 = vmatprep.mubr.f32.mxu0 %v782_v0 }
  0x50   :  { %367 = vmatprep.mubr.f32.mxu1 %v782_v0 }
  0x52   :  { %212 = vmatmul.mubr.f32.gmra.mrb[14].mxu0 %v35_v41 }
  0x53   :  { %368 = vmatmul.mubr.f32.gmra.mrb[14].mxu1 %v35_v41  ;;  %216 = vmatprep.mubr.f32.mxu0 %v782_v0 }
  0x54   :  { %373 = vmatprep.mubr.f32.mxu1 %v782_v0 }
  0x56   :  { %217 = vmatmul.mubr.f32.gmra.mrb[16].mxu0 %v36_v42 }
  0x57   :  { %374 = vmatmul.mubr.f32.gmra.mrb[16].mxu1 %v36_v42  ;;  %222 = vmatprep.mubr.f32.mxu0 %v782_v0 }
  0x58   :  { %379 = vmatprep.mubr.f32.mxu1 %v782_v0 }
  0x5a   :  { %223 = vmatmul.mubr.f32.gmra.mrb[18].mxu0 %v37_v43 }
  0x5b   :  { %380 = vmatmul.mubr.f32.gmra.mrb[18].mxu1 %v37_v43  ;;  %227 = vmatprep.mubr.f32.mxu0 %v782_v0 }
  0x5c   :  { %385 = vmatprep.mubr.f32.mxu1 %v782_v0 }
  0x5e   :  { %228 = vmatmul.mubr.f32.gmra.mrb[20].mxu0 %v38_v44 }
  0x5f   :  { %386 = vmatmul.mubr.f32.gmra.mrb[20].mxu1 %v38_v44  ;;  %233 = vmatprep.mubr.f32.mxu0 %v782_v0 }
  0x60   :  { %391 = vmatprep.mubr.f32.mxu1 %v782_v0 }
  0x62   :  { %234 = vmatmul.mubr.f32.gmra.mrb[22].mxu0 %v39_v45 }
  0x63   :  { %392 = vmatmul.mubr.f32.gmra.mrb[22].mxu1 %v39_v45  ;;  %238 = vmatprep.mubr.f32.mxu0 %v782_v0 }
  0x64   :  { %397 = vmatprep.mubr.f32.mxu1 %v782_v0 }
  0x66   :  { %239 = vmatmul.mubr.f32.gmra.mrb[24].mxu0 %v40_v46 }
  0x67   :  { %398 = vmatmul.mubr.f32.gmra.mrb[24].mxu1 %v40_v46  ;;  %244 = vmatprep.mubr.f32.mxu0 %v782_v0 }
  0x68   :  { %403 = vmatprep.mubr.f32.mxu1 %v782_v0 }
  0x6a   :  { %245 = vmatmul.mubr.f32.gmra.mrb[26].mxu0 %v41_v47 }
  0x6b   :  { %404 = vmatmul.mubr.f32.gmra.mrb[26].mxu1 %v41_v47  ;;  %249 = vmatprep.mubr.f32.mxu0 %v782_v0 }
  0x6c   :  { %409 = vmatprep.mubr.f32.mxu1 %v782_v0 }
  0x6e   :  { %250 = vmatmul.mubr.f32.gmra.mrb[28].mxu0 %v42_v48 }
  0x6f   :  { %410 = vmatmul.mubr.f32.gmra.mrb[28].mxu1 %v42_v48  ;;  %255 = vmatprep.mubr.f32.mxu0 %v782_v0 }
  0x70   :  { %415 = vmatprep.mubr.f32.mxu1 %v782_v0 }
  0x72   :  { %256 = vmatmul.mubr.f32.gmra.mrb[30].mxu0 %v43_v49 }
  0x73   :  { %416 = vmatmul.mubr.f32.gmra.mrb[30].mxu1 %v43_v49 }
 0x109   :  { %v174_v50 = vpop.f32.mrb[0].mxu0 }
 0x10a   :  { %v176_v51 = vpop.f32.mrb[1].mxu0  ;;  %v327_v52 = vpop.f32.mrb[0].mxu1  ;;  %v423_v62 = vadd.f32 %v898_v54, %v174_v50 }
 0x10b   :  { %v329_v53 = vpop.f32.mrb[1].mxu1  ;;  %v505_v55 = vrot.slane %v327_v52, 2  ;;  %v448_v59 = vrot.slane %v176_v51, 1 }
 0x10c   :  { %v562_v63 = vrot.slane %v329_v53, 3 }
 0x10d   :  { %v180_v56 = vpop.f32.mrb[2].mxu0 }
 0x10e   :  { %v333_v57 = vpop.f32.mrb[2].mxu1  ;;  %v181_v58 = vpop.f32.mrb[3].mxu0 }
 0x10f   :  { %v506_v60 = vrot.slane %v333_v57, 2  ;;  %v449_v0 = vrot.slane %v181_v58, 1  ;;  %v335_v61 = vpop.f32.mrb[3].mxu1 }
 0x110   :  { %v563_v1 = vrot.slane %v335_v61, 3 }
 0x111   :  { %v507_v2 = vsel %vm504_vm0, %v505_v55, %v506_v60  ;;  %v450_v3 = vsel %vm447_vm1, %v448_v59, %v449_v0  ;;  %v185_v4 = vpop.f32.mrb[4].mxu0 }
 0x112   :  { %v480_v5 = vadd.f32 %v450_v3, %v423_v62  ;;  %v564_v6 = vsel %vm561_vm2, %v562_v63, %v563_v1  ;;  %v187_v7 = vpop.f32.mrb[5].mxu0  ;;  %v339_v8 = vpop.f32.mrb[4].mxu1  ;;  %v424_v21 = vadd.f32 %v898_v54, %v185_v4 }
 0x113   :  { %v341_v9 = vpop.f32.mrb[5].mxu1  ;;  %v508_v11 = vrot.slane %v339_v8, 2  ;;  %v451_v16 = vrot.slane %v187_v7, 1 }
 0x114   :  { %v537_v10 = vadd.f32 %v507_v2, %v480_v5  ;;  %v565_v22 = vrot.slane %v341_v9, 3 }
 0x115   :  { %v191_v12 = vpop.f32.mrb[6].mxu0 }
 0x116   :  { %v594_v13 = vadd.f32 %v564_v6, %v537_v10  ;;  %v345_v14 = vpop.f32.mrb[6].mxu1  ;;  %v192_v15 = vpop.f32.mrb[7].mxu0 }
 0x117   :  { %v509_v17 = vrot.slane %v345_v14, 2  ;;  %v452_v18 = vrot.slane %v192_v15, 1  ;;  %v347_v19 = vpop.f32.mrb[7].mxu1 }
 0x118   :  { %v602_v20 = vrot.slane %v594_v13, 4  ;;  %v566_v23 = vrot.slane %v347_v19, 3 }
 0x119   :  { %v510_v24 = vsel %vm504_vm0, %v508_v11, %v509_v17  ;;  %v453_v25 = vsel %vm447_vm1, %v451_v16, %v452_v18  ;;  %v196_v26 = vpop.f32.mrb[8].mxu0 }
 0x11a   :  { %v603_v27 = vmax.f32 %v594_v13, %v602_v20  ;;  %v481_v28 = vadd.f32 %v453_v25, %v424_v21  ;;  %v567_v29 = vsel %vm561_vm2, %v565_v22, %v566_v23  ;;  %v198_v30 = vpop.f32.mrb[9].mxu0  ;;  %v351_v31 = vpop.f32.mrb[8].mxu1  ;;  %v425_v46 = vadd.f32 %v898_v54, %v196_v26 }
 0x11b   :  { %v353_v32 = vpop.f32.mrb[9].mxu1  ;;  %v511_v35 = vrot.slane %v351_v31, 2  ;;  %v454_v41 = vrot.slane %v198_v30, 1 }
 0x11c   :  { %v604_v33 = vrot.slane %v603_v27, 2  ;;  %v538_v34 = vadd.f32 %v510_v24, %v481_v28  ;;  %v568_v47 = vrot.slane %v353_v32, 3 }
 0x11d   :  { %v202_v36 = vpop.f32.mrb[10].mxu0 }
 0x11e   :  { %v605_v37 = vmax.f32 %v603_v27, %v604_v33  ;;  %v595_v38 = vadd.f32 %v567_v29, %v538_v34  ;;  %v357_v39 = vpop.f32.mrb[10].mxu1  ;;  %v203_v40 = vpop.f32.mrb[11].mxu0 }
 0x11f   :  { %v512_v42 = vrot.slane %v357_v39, 2  ;;  %v455_v43 = vrot.slane %v203_v40, 1  ;;  %v359_v44 = vpop.f32.mrb[11].mxu1 }
 0x120   :  { %v608_v45 = vrot.slane %v595_v38, 4  ;;  %v569_v48 = vrot.slane %v359_v44, 3  ;;  %v606_v52 = vrot.slane %v605_v37, 1 }
 0x121   :  { %v513_v49 = vsel %vm504_vm0, %v511_v35, %v512_v42  ;;  %v456_v50 = vsel %vm447_vm1, %v454_v41, %v455_v43  ;;  %v207_v51 = vpop.f32.mrb[12].mxu0 }
 0x122   :  { %v609_v53 = vmax.f32 %v595_v38, %v608_v45  ;;  %v482_v55 = vadd.f32 %v456_v50, %v425_v46  ;;  %v570_v56 = vsel %vm561_vm2, %v568_v47, %v569_v48  ;;  %v209_v57 = vpop.f32.mrb[13].mxu0  ;;  %v363_v58 = vpop.f32.mrb[12].mxu1  ;;  %v607_v63 = vmax.f32 %v605_v37, %v606_v52 }
 0x123   :  { %v365_v59 = vpop.f32.mrb[13].mxu1  ;;  %v514_v61 = vrot.slane %v363_v58, 2  ;;  %v426_v5 = vadd.f32 %v898_v54, %v207_v51  ;;  %v457_v6 = vrot.slane %v209_v57, 1 }
 0x124   :  { %v610_v60 = vrot.slane %v609_v53, 2  ;;  %v539_v0 = vadd.f32 %v513_v49, %v482_v55  ;;  %v571_v12 = vrot.slane %v365_v59, 3  ;;  %v650_v24 = vmax.f32 %v607_v63, 0.0 }
 0x125   :  { %v213_v62 = vpop.f32.mrb[14].mxu0 }
 0x126   :  { %v611_v1 = vmax.f32 %v609_v53, %v610_v60  ;;  %v596_v2 = vadd.f32 %v570_v56, %v539_v0  ;;  %v369_v3 = vpop.f32.mrb[14].mxu1  ;;  %v214_v4 = vpop.f32.mrb[15].mxu0 }
 0x127   :  { %v515_v7 = vrot.slane %v369_v3, 2  ;;  %v458_v8 = vrot.slane %v214_v4, 1  ;;  %v371_v9 = vpop.f32.mrb[15].mxu1 }
 0x128   :  { %v612_v10 = vrot.slane %v611_v1, 1  ;;  %v614_v11 = vrot.slane %v596_v2, 4  ;;  %v572_v13 = vrot.slane %v371_v9, 3 }
 0x129   :  { %v516_v14 = vsel %vm504_vm0, %v514_v61, %v515_v7  ;;  %v459_v15 = vsel %vm447_vm1, %v457_v6, %v458_v8  ;;  %v218_v16 = vpop.f32.mrb[16].mxu0 }
 0x12a   :  { %v613_v17 = vmax.f32 %v611_v1, %v612_v10  ;;  %v615_v18 = vmax.f32 %v596_v2, %v614_v11  ;;  %v483_v19 = vadd.f32 %v459_v15, %v426_v5  ;;  %v573_v20 = vsel %vm561_vm2, %v571_v12, %v572_v13  ;;  %v220_v21 = vpop.f32.mrb[17].mxu0  ;;  %v375_v22 = vpop.f32.mrb[16].mxu1 }
 0x12b   :  { %v377_v23 = vpop.f32.mrb[17].mxu1  ;;  %v517_v28 = vrot.slane %v375_v22, 2  ;;  %v427_v35 = vadd.f32 %v898_v54, %v218_v16  ;;  %v460_v36 = vrot.slane %v220_v21, 1 }
 0x12c   :  { %v651_v25 = vmax.f32 %v613_v17, 0.0  ;;  %v616_v26 = vrot.slane %v615_v18, 2  ;;  %v540_v27 = vadd.f32 %v516_v14, %v483_v19  ;;  %v574_v42 = vrot.slane %v377_v23, 3 }
 0x12d   :  { %v224_v29 = vpop.f32.mrb[18].mxu0 }
 0x12e   :  { %v667_v30 = vsel %vm666_vm3, %v651_v25, %v650_v24  ;;  %v617_v31 = vmax.f32 %v615_v18, %v616_v26  ;;  %v597_v32 = vadd.f32 %v573_v20, %v540_v27  ;;  %v381_v33 = vpop.f32.mrb[18].mxu1  ;;  %v225_v34 = vpop.f32.mrb[19].mxu0 }
 0x12f   :  { %v518_v37 = vrot.slane %v381_v33, 2  ;;  %v461_v38 = vrot.slane %v225_v34, 1  ;;  %v383_v39 = vpop.f32.mrb[19].mxu1 }
 0x130   :  { %v618_v40 = vrot.slane %v617_v31, 1  ;;  %v620_v41 = vrot.slane %v597_v32, 4  ;;  %v575_v43 = vrot.slane %v383_v39, 3 }
 0x131   :  { %v519_v44 = vsel %vm504_vm0, %v517_v28, %v518_v37  ;;  %v462_v45 = vsel %vm447_vm1, %v460_v36, %v461_v38  ;;  %v229_v46 = vpop.f32.mrb[20].mxu0 }
 0x132   :  { %v619_v47 = vmax.f32 %v617_v31, %v618_v40  ;;  %v621_v48 = vmax.f32 %v597_v32, %v620_v41  ;;  %v484_v49 = vadd.f32 %v462_v45, %v427_v35  ;;  %v576_v50 = vsel %vm561_vm2, %v574_v42, %v575_v43  ;;  %v231_v51 = vpop.f32.mrb[21].mxu0  ;;  %v387_v52 = vpop.f32.mrb[20].mxu1 }
 0x133   :  { %v389_v53 = vpop.f32.mrb[21].mxu1  ;;  %v520_v58 = vrot.slane %v387_v52, 2  ;;  %v428_v1 = vadd.f32 %v898_v54, %v229_v46  ;;  %v463_v2 = vrot.slane %v231_v51, 1 }
 0x134   :  { %v652_v55 = vmax.f32 %v619_v47, 0.0  ;;  %v622_v56 = vrot.slane %v621_v48, 2  ;;  %v541_v57 = vadd.f32 %v519_v44, %v484_v49  ;;  %v577_v8 = vrot.slane %v389_v53, 3 }
 0x135   :  { %v235_v59 = vpop.f32.mrb[22].mxu0 }
 0x136   :  { %v669_v60 = vsel %vm668_vm4, %v652_v55, %v667_v30  ;;  %v623_v0 = vmax.f32 %v621_v48, %v622_v56  ;;  %v598_v61 = vadd.f32 %v576_v50, %v541_v57  ;;  %v393_v62 = vpop.f32.mrb[22].mxu1  ;;  %v236_v63 = vpop.f32.mrb[23].mxu0 }
 0x137   :  { %v521_v3 = vrot.slane %v393_v62, 2  ;;  %v464_v4 = vrot.slane %v236_v63, 1  ;;  %v395_v5 = vpop.f32.mrb[23].mxu1 }
 0x138   :  { %v624_v6 = vrot.slane %v623_v0, 1  ;;  %v626_v7 = vrot.slane %v598_v61, 4  ;;  %v578_v9 = vrot.slane %v395_v5, 3 }
 0x139   :  { %v522_v10 = vsel %vm504_vm0, %v520_v58, %v521_v3  ;;  %v465_v11 = vsel %vm447_vm1, %v463_v2, %v464_v4  ;;  %v240_v12 = vpop.f32.mrb[24].mxu0 }
 0x13a   :  { %v625_v13 = vmax.f32 %v623_v0, %v624_v6  ;;  %v627_v14 = vmax.f32 %v598_v61, %v626_v7  ;;  %v485_v15 = vadd.f32 %v465_v11, %v428_v1  ;;  %v579_v16 = vsel %vm561_vm2, %v577_v8, %v578_v9  ;;  %v242_v17 = vpop.f32.mrb[25].mxu0  ;;  %v399_v18 = vpop.f32.mrb[24].mxu1 }
 0x13b   :  { %v401_v19 = vpop.f32.mrb[25].mxu1  ;;  %v523_v23 = vrot.slane %v399_v18, 2  ;;  %v429_v30 = vadd.f32 %v898_v54, %v240_v12  ;;  %v466_v31 = vrot.slane %v242_v17, 1 }
 0x13c   :  { %v653_v20 = vmax.f32 %v625_v13, 0.0  ;;  %v628_v21 = vrot.slane %v627_v14, 2  ;;  %v542_v22 = vadd.f32 %v522_v10, %v485_v15  ;;  %v580_v37 = vrot.slane %v401_v19, 3 }
 0x13d   :  { %v246_v24 = vpop.f32.mrb[26].mxu0 }
 0x13e   :  { %v671_v25 = vsel %vm670_vm5, %v653_v20, %v669_v60  ;;  %v629_v26 = vmax.f32 %v627_v14, %v628_v21  ;;  %v599_v27 = vadd.f32 %v579_v16, %v542_v22  ;;  %v405_v28 = vpop.f32.mrb[26].mxu1  ;;  %v247_v29 = vpop.f32.mrb[27].mxu0 }
 0x13f   :  { %v524_v32 = vrot.slane %v405_v28, 2  ;;  %v467_v33 = vrot.slane %v247_v29, 1  ;;  %v407_v34 = vpop.f32.mrb[27].mxu1 }
 0x140   :  { %v630_v35 = vrot.slane %v629_v26, 1  ;;  %v632_v36 = vrot.slane %v599_v27, 4  ;;  %v581_v38 = vrot.slane %v407_v34, 3 }
 0x141   :  { %v525_v39 = vsel %vm504_vm0, %v523_v23, %v524_v32  ;;  %v468_v40 = vsel %vm447_vm1, %v466_v31, %v467_v33  ;;  %v251_v41 = vpop.f32.mrb[28].mxu0 }
 0x142   :  { %v631_v42 = vmax.f32 %v629_v26, %v630_v35  ;;  %v633_v43 = vmax.f32 %v599_v27, %v632_v36  ;;  %v486_v44 = vadd.f32 %v468_v40, %v429_v30  ;;  %v582_v45 = vsel %vm561_vm2, %v580_v37, %v581_v38  ;;  %v253_v46 = vpop.f32.mrb[29].mxu0  ;;  %v411_v47 = vpop.f32.mrb[28].mxu1 }
 0x143   :  { %v413_v48 = vpop.f32.mrb[29].mxu1  ;;  %v526_v52 = vrot.slane %v411_v47, 2  ;;  %v430_v60 = vadd.f32 %v898_v54, %v251_v41  ;;  %v469_v0 = vrot.slane %v253_v46, 1 }
 0x144   :  { %v654_v49 = vmax.f32 %v631_v42, 0.0  ;;  %v634_v50 = vrot.slane %v633_v43, 2  ;;  %v543_v51 = vadd.f32 %v525_v39, %v486_v44  ;;  %v583_v3 = vrot.slane %v413_v48, 3 }
 0x145   :  { %v257_v53 = vpop.f32.mrb[30].mxu0 }
 0x146   :  { %v673_v55 = vsel %vm672_vm6, %v654_v49, %v671_v25  ;;  %v635_v56 = vmax.f32 %v633_v43, %v634_v50  ;;  %v600_v57 = vadd.f32 %v582_v45, %v543_v51  ;;  %v417_v58 = vpop.f32.mrb[30].mxu1  ;;  %v258_v59 = vpop.f32.mrb[31].mxu0 }
 0x147   :  { %v527_v61 = vrot.slane %v417_v58, 2  ;;  %v470_v62 = vrot.slane %v258_v59, 1  ;;  %v419_v63 = vpop.f32.mrb[31].mxu1 }
 0x148   :  { %v636_v1 = vrot.slane %v635_v56, 1  ;;  %v638_v2 = vrot.slane %v600_v57, 4  ;;  %v584_v4 = vrot.slane %v419_v63, 3 }
 0x149   :  { %v528_v5 = vsel %vm504_vm0, %v526_v52, %v527_v61  ;;  %v471_v6 = vsel %vm447_vm1, %v469_v0, %v470_v62 }
 0x14a   :  { %v637_v7 = vmax.f32 %v635_v56, %v636_v1  ;;  %v639_v8 = vmax.f32 %v600_v57, %v638_v2  ;;  %v487_v9 = vadd.f32 %v471_v6, %v430_v60  ;;  %v585_v10 = vsel %vm561_vm2, %v583_v3, %v584_v4 }
 0x14c   :  { %v655_v11 = vmax.f32 %v637_v7, 0.0  ;;  %v640_v54 = vrot.slane %v639_v8, 2  ;;  %v544_v12 = vadd.f32 %v528_v5, %v487_v9 }
 0x14e   :  { %v675_v13 = vsel %vm674_vm7, %v655_v11, %v673_v55  ;;  %v641_v14 = vmax.f32 %v639_v8, %v640_v54  ;;  %v601_v15 = vadd.f32 %v585_v10, %v544_v12 }
 0x150   :  { %v642_v16 = vrot.slane %v641_v14, 1  ;;  %v644_v17 = vrot.slane %v601_v15, 4 }
 0x152   :  { %v643_v18 = vmax.f32 %v641_v14, %v642_v16  ;;  %v645_v19 = vmax.f32 %v601_v15, %v644_v17 }
 0x154   :  { %v656_v20 = vmax.f32 %v643_v18, 0.0  ;;  %v646_v21 = vrot.slane %v645_v19, 2 }
 0x156   :  { %v677_v22 = vsel %vm676_vm8, %v656_v20, %v675_v13  ;;  %v647_v23 = vmax.f32 %v645_v19, %v646_v21 }
 0x158   :  { %v648_v24 = vrot.slane %v647_v23, 1 }
 0x15a   :  { %v649_v25 = vmax.f32 %v647_v23, %v648_v24 }
 0x15c   :  { %v657_v26 = vmax.f32 %v649_v25, 0.0 }
 0x15e   :  { %v679_v27 = vsel %vm678_vm9, %v657_v26, %v677_v22 }
 0x15f   :  { %681 = vst [vmem:[%s938_s3] sm:$0xff] %v679_v27 }
 0x160   :  { %686 = vsyncpa [#allocation3], 1 }

</bundles_post_ra>
